<compile_context>
chip_gen: v7x
topology: tpu7x:2x2x1
jax: 0.10.0
libtpu: 0.0.40
codegen_flags: <defaults>
</compile_context>

<pallas_src>
import functools

import jax
import jax.numpy as jnp
from jax.experimental import pallas as pl
from jax.experimental.pallas import tpu as pltpu

BN_EPS = 1e-5
LEAKY_SLOPE = 0.2


def _round_up(v, m):
    return (v + m - 1) // m * m


def _make_code_dis_kernel(num_bn_layers, real_batch, padded_batch):
    """Fused MLP kernel: num_bn_layers x (Linear+BN+LeakyReLU) then Linear+Sigmoid."""
    inv_n = 1.0 / float(real_batch)
    needs_mask = padded_batch != real_batch

    def kernel(*refs):
        # refs: x_ref, [w, b, gamma, beta] * num_bn_layers, wf, bf, out_ref
        x_ref = refs[0]
        out_ref = refs[-1]
        params = refs[1:-1]

        if needs_mask:
            row_ids = jax.lax.broadcasted_iota(jnp.int32, (padded_batch, 1), 0)
            mask = (row_ids < real_batch).astype(jnp.float32)
        else:
            mask = None

        # x is already bf16 -> feeds the first MXU op directly.
        h = x_ref[...]

        idx = 0
        for _ in range(num_bn_layers):
            w_ref, b_ref, g_ref, be_ref = params[idx:idx + 4]
            idx += 4

            # Linear on the MXU: bf16 operands, f32 accumulation.
            h = jnp.dot(h.astype(jnp.bfloat16), w_ref[...],
                        preferred_element_type=jnp.float32) + b_ref[...]

            # BatchNorm1d (training mode: batch mean, biased variance) in ONE
            # pass: accumulate sum and sum-of-squares over the real batch rows.
            hm = h * mask if needs_mask else h
            s = jnp.sum(hm, axis=0, keepdims=True)
            ss = jnp.sum(hm * h, axis=0, keepdims=True)
            mean = s * inv_n
            var = jnp.maximum(ss * inv_n - mean * mean, 0.0)
            scale = jax.lax.rsqrt(var + BN_EPS) * g_ref[...]
            shift = be_ref[...] - mean * scale
            # Folded affine: one mul + one add per element.
            h = h * scale + shift

            # LeakyReLU(0.2) == max(h, 0.2*h) (single VALU op).
            h = jnp.maximum(h, LEAKY_SLOPE * h)

        # Final Linear(n_hidden, 1) as VPU multiply + lane reduction (wf is [1, H]).
        wf_ref, bf_ref = params[idx], params[idx + 1]
        logit = jnp.sum(h * wf_ref[...], axis=-1, keepdims=True) + bf_ref[...]
        out_ref[...] = (pl.reciprocal(1.0 + jnp.exp(-logit), approx=False)
                        ).astype(out_ref.dtype)

    return kernel


def init_code_discriminator_params(key, n_z, n_hidden, depth):
    """Parameter init mimicking PyTorch nn.Linear / nn.BatchNorm1d defaults.

    Returns a flat list:
      [w1, b1, g1, be1, ..., w_{depth-1}, b_{depth-1}, g_{depth-1}, be_{depth-1}, wf, bf]
    Linear weights are stored transposed: shape [in_features, out_features] (f32;
    the wrapper casts them to bf16 for the MXU).
    """
    num_bn_layers = depth - 1
    params = []
    in_dim = n_z
    for _ in range(num_bn_layers):
        key, kw, kb = jax.random.split(key, 3)
        bound = 1.0 / jnp.sqrt(in_dim)
        w = jax.random.uniform(kw, (in_dim, n_hidden), jnp.float32, -bound, bound)
        b = jax.random.uniform(kb, (n_hidden,), jnp.float32, -bound, bound)
        gamma = jnp.ones((n_hidden,), jnp.float32)
        beta = jnp.zeros((n_hidden,), jnp.float32)
        params += [w, b, gamma, beta]
        in_dim = n_hidden
    key, kw, kb = jax.random.split(key, 3)
    bound = 1.0 / jnp.sqrt(n_hidden)
    wf = jax.random.uniform(kw, (n_hidden, 1), jnp.float32, -bound, bound)
    bf = jax.random.uniform(kb, (1,), jnp.float32, -bound, bound)
    params += [wf, bf]
    return params


@functools.partial(jax.jit, static_argnames=("n_z", "n_hidden", "depth"))
def code_discriminator_forward(x, params, *, n_z, n_hidden, depth):
    """Wrapper: reshape to (-1, n_z), pad to lane-dense shapes, run fused kernel."""
    x2d = x.reshape(-1, n_z)                      # pass_.view(-1, n_z)
    batch = x2d.shape[0]
    num_bn = depth - 1

    nz_pad = _round_up(n_z, 128)
    nh_pad = _round_up(n_hidden, 128)
    b_pad = _round_up(batch, 8)

    # Pad activations / params to (sublane=8, lane=128)-dense shapes. Padded
    # feature columns have zero weight/bias/gamma/beta -> they stay exactly 0
    # through every layer; padded batch rows are masked out of BN statistics.
    x_p = jnp.zeros((b_pad, nz_pad), jnp.bfloat16).at[:batch, :n_z].set(
        x2d.astype(jnp.bfloat16))

    padded = []
    in_dim, in_pad = n_z, nz_pad
    idx = 0
    for _ in range(num_bn):
        w, b, g, be = params[idx:idx + 4]
        idx += 4
        w_p = jnp.zeros((in_pad, nh_pad), jnp.bfloat16).at[:in_dim, :n_hidden].set(
            w.astype(jnp.bfloat16))
        b_p = jnp.zeros((1, nh_pad), jnp.float32).at[:, :n_hidden].set(
            b.reshape(1, -1).astype(jnp.float32))
        g_p = jnp.zeros((1, nh_pad), jnp.float32).at[:, :n_hidden].set(
            g.reshape(1, -1).astype(jnp.float32))
        be_p = jnp.zeros((1, nh_pad), jnp.float32).at[:, :n_hidden].set(
            be.reshape(1, -1).astype(jnp.float32))
        padded += [w_p, b_p, g_p, be_p]
        in_dim, in_pad = n_hidden, nh_pad

    wf, bf = params[idx], params[idx + 1]
    # Final weight as a [1, H] row (f32) for the VPU multiply + lane reduce.
    wf_p = jnp.zeros((1, nh_pad), jnp.float32).at[:, :n_hidden].set(
        wf.reshape(1, -1).astype(jnp.float32))
    bf_p = bf.reshape(1, 1).astype(jnp.float32)
    padded += [wf_p, bf_p]

    # Size the scoped VMEM limit from the real footprint (params + activations,
    # x2 for double-buffering headroom), clamped to the v7x 64 MiB physical cap.
    param_bytes = sum(int(p.size) * p.dtype.itemsize for p in padded)
    act_bytes = b_pad * max(nz_pad, nh_pad) * 4
    est = (2 * (int(x_p.size) * x_p.dtype.itemsize + param_bytes)
           + 8 * act_bytes + (1 << 21))
    vmem_limit = int(min(64 * 2 ** 20, max(32 * 2 ** 20, est)))

    vmem_spec = pl.BlockSpec(memory_space=pltpu.MemorySpace.VMEM)
    out = pl.pallas_call(
        _make_code_dis_kernel(num_bn, batch, b_pad),
        out_shape=jax.ShapeDtypeStruct((b_pad, 1), jnp.float32),
        in_specs=[vmem_spec] * (1 + len(padded)),
        out_specs=vmem_spec,
        compiler_params=pltpu.CompilerParams(vmem_limit_bytes=vmem_limit),
    )(x_p, *padded)

    return out[:batch].reshape(-1, 1).astype(x.dtype)   # pass_.view(-1, 1)


def reference_forward(x, params, n_z, depth):
    """Pure-JAX reference (PyTorch semantics, same bf16-operand matmul policy)."""
    h = x.reshape(-1, n_z).astype(jnp.float32)
    num_bn = depth - 1
    idx = 0
    for _ in range(num_bn):
        w, b, g, be = params[idx:idx + 4]
        idx += 4
        h = jnp.dot(h.astype(jnp.bfloat16), w.astype(jnp.bfloat16),
                    preferred_element_type=jnp.float32) + b.reshape(1, -1)
        mean = jnp.mean(h, axis=0, keepdims=True)
        var = jnp.mean((h - mean) ** 2, axis=0, keepdims=True)
        h = (h - mean) / jnp.sqrt(var + BN_EPS) * g.reshape(1, -1) + be.reshape(1, -1)
        h = jnp.where(h > 0, h, LEAKY_SLOPE * h)
    wf, bf = params[idx], params[idx + 1]
    return jax.nn.sigmoid(h @ wf + bf.reshape(1, 1)).reshape(-1, 1)


if __name__ == "__main__":
    # Small, deterministic configuration (shapes get lane-padded inside the wrapper).
    n_z, n_hidden, depth = 16, 32, 4
    batch = 8

    key = jax.random.PRNGKey(0)
    key_x, key_p = jax.random.split(key)
    x = jax.random.normal(key_x, (batch, n_z), dtype=jnp.float32)
    params = init_code_discriminator_params(key_p, n_z, n_hidden, depth)

    out = code_discriminator_forward(x, params, n_z=n_z, n_hidden=n_hidden, depth=depth)
    out = jax.block_until_ready(out)

    assert out.shape == (batch, 1), out.shape

    # bf16 matmul operands bound achievable kernel-vs-reference agreement;
    # 1e-3 on a sigmoid output in (0, 1) is a tight functional check.
    ref = reference_forward(x, params, n_z, depth)
    assert jnp.allclose(out, ref, atol=1e-3, rtol=1e-3), (out, ref)

    print("KERNEL_OK")
</pallas_src>

<mosaic_0001>
module attributes {stable_mosaic.version = 11 : i64} {
  func.func @kernel(%arg0: memref<8x128xbf16, #tpu.memory_space<vmem>>, %arg1: memref<128x128xbf16, #tpu.memory_space<vmem>>, %arg2: memref<1x128xf32, #tpu.memory_space<vmem>>, %arg3: memref<1x128xf32, #tpu.memory_space<vmem>>, %arg4: memref<1x128xf32, #tpu.memory_space<vmem>>, %arg5: memref<128x128xbf16, #tpu.memory_space<vmem>>, %arg6: memref<1x128xf32, #tpu.memory_space<vmem>>, %arg7: memref<1x128xf32, #tpu.memory_space<vmem>>, %arg8: memref<1x128xf32, #tpu.memory_space<vmem>>, %arg9: memref<128x128xbf16, #tpu.memory_space<vmem>>, %arg10: memref<1x128xf32, #tpu.memory_space<vmem>>, %arg11: memref<1x128xf32, #tpu.memory_space<vmem>>, %arg12: memref<1x128xf32, #tpu.memory_space<vmem>>, %arg13: memref<1x128xf32, #tpu.memory_space<vmem>>, %arg14: memref<1x1xf32, #tpu.memory_space<vmem>>, %arg15: memref<8x1xf32, #tpu.memory_space<vmem>>) attributes {dimension_semantics = [], scalar_prefetch = 0 : i64, scratch_operands = 0 : i64, tpu.core_type = #tpu.core_type<tc>} {
    %c0 = arith.constant 0 : index
    %c0_0 = arith.constant 0 : index
    %0 = vector.load %arg0[%c0, %c0_0] : memref<8x128xbf16, #tpu.memory_space<vmem>>, vector<8x128xbf16>
    %c0_1 = arith.constant 0 : index
    %c0_2 = arith.constant 0 : index
    %1 = vector.load %arg1[%c0_1, %c0_2] : memref<128x128xbf16, #tpu.memory_space<vmem>>, vector<128x128xbf16>
    %cst = arith.constant dense<0.000000e+00> : vector<8x128xf32>
    %2 = tpu.matmul %0, %1, %cst {dimension_numbers = #tpu.dot_dimension_numbers<[1], [0], [0], [1], [0, 0, 1, 1], [], []>} : vector<8x128xbf16>, vector<128x128xbf16>, vector<8x128xf32> -> vector<8x128xf32>
    %c0_3 = arith.constant 0 : index
    %c0_4 = arith.constant 0 : index
    %3 = vector.load %arg2[%c0_3, %c0_4] : memref<1x128xf32, #tpu.memory_space<vmem>>, vector<1x128xf32>
    %4 = vector.broadcast %3 : vector<1x128xf32> to vector<8x128xf32>
    %5 = arith.addf %2, %4 : vector<8x128xf32>
    %cst_5 = arith.constant dense<0.000000e+00> : vector<128xf32>
    %6 = vector.multi_reduction <add>, %5, %cst_5 [0] : vector<8x128xf32> to vector<128xf32>
    %7 = vector.shape_cast %6 : vector<128xf32> to vector<1x128xf32>
    %8 = arith.mulf %5, %5 : vector<8x128xf32>
    %cst_6 = arith.constant dense<0.000000e+00> : vector<128xf32>
    %9 = vector.multi_reduction <add>, %8, %cst_6 [0] : vector<8x128xf32> to vector<128xf32>
    %10 = vector.shape_cast %9 : vector<128xf32> to vector<1x128xf32>
    %cst_7 = arith.constant 1.250000e-01 : f32
    %11 = vector.broadcast %cst_7 : f32 to vector<1x128xf32>
    %12 = arith.mulf %7, %11 : vector<1x128xf32>
    %cst_8 = arith.constant 1.250000e-01 : f32
    %13 = vector.broadcast %cst_8 : f32 to vector<1x128xf32>
    %14 = arith.mulf %10, %13 : vector<1x128xf32>
    %15 = arith.mulf %12, %12 : vector<1x128xf32>
    %16 = arith.subf %14, %15 : vector<1x128xf32>
    %cst_9 = arith.constant 0.000000e+00 : f32
    %17 = vector.broadcast %cst_9 : f32 to vector<1x128xf32>
    %18 = arith.maximumf %16, %17 : vector<1x128xf32>
    %cst_10 = arith.constant 9.99999974E-6 : f32
    %19 = vector.broadcast %cst_10 : f32 to vector<1x128xf32>
    %20 = arith.addf %18, %19 : vector<1x128xf32>
    %21 = math.rsqrt %20 : vector<1x128xf32>
    %c0_11 = arith.constant 0 : index
    %c0_12 = arith.constant 0 : index
    %22 = vector.load %arg3[%c0_11, %c0_12] : memref<1x128xf32, #tpu.memory_space<vmem>>, vector<1x128xf32>
    %23 = arith.mulf %21, %22 : vector<1x128xf32>
    %c0_13 = arith.constant 0 : index
    %c0_14 = arith.constant 0 : index
    %24 = vector.load %arg4[%c0_13, %c0_14] : memref<1x128xf32, #tpu.memory_space<vmem>>, vector<1x128xf32>
    %25 = arith.mulf %12, %23 : vector<1x128xf32>
    %26 = arith.subf %24, %25 : vector<1x128xf32>
    %27 = vector.broadcast %23 : vector<1x128xf32> to vector<8x128xf32>
    %28 = arith.mulf %5, %27 : vector<8x128xf32>
    %29 = vector.broadcast %26 : vector<1x128xf32> to vector<8x128xf32>
    %30 = arith.addf %28, %29 : vector<8x128xf32>
    %cst_15 = arith.constant 2.000000e-01 : f32
    %31 = vector.broadcast %cst_15 : f32 to vector<8x128xf32>
    %32 = arith.mulf %31, %30 : vector<8x128xf32>
    %33 = arith.maximumf %30, %32 : vector<8x128xf32>
    %34 = arith.truncf %33 : vector<8x128xf32> to vector<8x128xbf16>
    %c0_16 = arith.constant 0 : index
    %c0_17 = arith.constant 0 : index
    %35 = vector.load %arg5[%c0_16, %c0_17] : memref<128x128xbf16, #tpu.memory_space<vmem>>, vector<128x128xbf16>
    %cst_18 = arith.constant dense<0.000000e+00> : vector<8x128xf32>
    %36 = tpu.matmul %34, %35, %cst_18 {dimension_numbers = #tpu.dot_dimension_numbers<[1], [0], [0], [1], [0, 0, 1, 1], [], []>} : vector<8x128xbf16>, vector<128x128xbf16>, vector<8x128xf32> -> vector<8x128xf32>
    %c0_19 = arith.constant 0 : index
    %c0_20 = arith.constant 0 : index
    %37 = vector.load %arg6[%c0_19, %c0_20] : memref<1x128xf32, #tpu.memory_space<vmem>>, vector<1x128xf32>
    %38 = vector.broadcast %37 : vector<1x128xf32> to vector<8x128xf32>
    %39 = arith.addf %36, %38 : vector<8x128xf32>
    %cst_21 = arith.constant dense<0.000000e+00> : vector<128xf32>
    %40 = vector.multi_reduction <add>, %39, %cst_21 [0] : vector<8x128xf32> to vector<128xf32>
    %41 = vector.shape_cast %40 : vector<128xf32> to vector<1x128xf32>
    %42 = arith.mulf %39, %39 : vector<8x128xf32>
    %cst_22 = arith.constant dense<0.000000e+00> : vector<128xf32>
    %43 = vector.multi_reduction <add>, %42, %cst_22 [0] : vector<8x128xf32> to vector<128xf32>
    %44 = vector.shape_cast %43 : vector<128xf32> to vector<1x128xf32>
    %cst_23 = arith.constant 1.250000e-01 : f32
    %45 = vector.broadcast %cst_23 : f32 to vector<1x128xf32>
    %46 = arith.mulf %41, %45 : vector<1x128xf32>
    %cst_24 = arith.constant 1.250000e-01 : f32
    %47 = vector.broadcast %cst_24 : f32 to vector<1x128xf32>
    %48 = arith.mulf %44, %47 : vector<1x128xf32>
    %49 = arith.mulf %46, %46 : vector<1x128xf32>
    %50 = arith.subf %48, %49 : vector<1x128xf32>
    %cst_25 = arith.constant 0.000000e+00 : f32
    %51 = vector.broadcast %cst_25 : f32 to vector<1x128xf32>
    %52 = arith.maximumf %50, %51 : vector<1x128xf32>
    %cst_26 = arith.constant 9.99999974E-6 : f32
    %53 = vector.broadcast %cst_26 : f32 to vector<1x128xf32>
    %54 = arith.addf %52, %53 : vector<1x128xf32>
    %55 = math.rsqrt %54 : vector<1x128xf32>
    %c0_27 = arith.constant 0 : index
    %c0_28 = arith.constant 0 : index
    %56 = vector.load %arg7[%c0_27, %c0_28] : memref<1x128xf32, #tpu.memory_space<vmem>>, vector<1x128xf32>
    %57 = arith.mulf %55, %56 : vector<1x128xf32>
    %c0_29 = arith.constant 0 : index
    %c0_30 = arith.constant 0 : index
    %58 = vector.load %arg8[%c0_29, %c0_30] : memref<1x128xf32, #tpu.memory_space<vmem>>, vector<1x128xf32>
    %59 = arith.mulf %46, %57 : vector<1x128xf32>
    %60 = arith.subf %58, %59 : vector<1x128xf32>
    %61 = vector.broadcast %57 : vector<1x128xf32> to vector<8x128xf32>
    %62 = arith.mulf %39, %61 : vector<8x128xf32>
    %63 = vector.broadcast %60 : vector<1x128xf32> to vector<8x128xf32>
    %64 = arith.addf %62, %63 : vector<8x128xf32>
    %cst_31 = arith.constant 2.000000e-01 : f32
    %65 = vector.broadcast %cst_31 : f32 to vector<8x128xf32>
    %66 = arith.mulf %65, %64 : vector<8x128xf32>
    %67 = arith.maximumf %64, %66 : vector<8x128xf32>
    %68 = arith.truncf %67 : vector<8x128xf32> to vector<8x128xbf16>
    %c0_32 = arith.constant 0 : index
    %c0_33 = arith.constant 0 : index
    %69 = vector.load %arg9[%c0_32, %c0_33] : memref<128x128xbf16, #tpu.memory_space<vmem>>, vector<128x128xbf16>
    %cst_34 = arith.constant dense<0.000000e+00> : vector<8x128xf32>
    %70 = tpu.matmul %68, %69, %cst_34 {dimension_numbers = #tpu.dot_dimension_numbers<[1], [0], [0], [1], [0, 0, 1, 1], [], []>} : vector<8x128xbf16>, vector<128x128xbf16>, vector<8x128xf32> -> vector<8x128xf32>
    %c0_35 = arith.constant 0 : index
    %c0_36 = arith.constant 0 : index
    %71 = vector.load %arg10[%c0_35, %c0_36] : memref<1x128xf32, #tpu.memory_space<vmem>>, vector<1x128xf32>
    %72 = vector.broadcast %71 : vector<1x128xf32> to vector<8x128xf32>
    %73 = arith.addf %70, %72 : vector<8x128xf32>
    %cst_37 = arith.constant dense<0.000000e+00> : vector<128xf32>
    %74 = vector.multi_reduction <add>, %73, %cst_37 [0] : vector<8x128xf32> to vector<128xf32>
    %75 = vector.shape_cast %74 : vector<128xf32> to vector<1x128xf32>
    %76 = arith.mulf %73, %73 : vector<8x128xf32>
    %cst_38 = arith.constant dense<0.000000e+00> : vector<128xf32>
    %77 = vector.multi_reduction <add>, %76, %cst_38 [0] : vector<8x128xf32> to vector<128xf32>
    %78 = vector.shape_cast %77 : vector<128xf32> to vector<1x128xf32>
    %cst_39 = arith.constant 1.250000e-01 : f32
    %79 = vector.broadcast %cst_39 : f32 to vector<1x128xf32>
    %80 = arith.mulf %75, %79 : vector<1x128xf32>
    %cst_40 = arith.constant 1.250000e-01 : f32
    %81 = vector.broadcast %cst_40 : f32 to vector<1x128xf32>
    %82 = arith.mulf %78, %81 : vector<1x128xf32>
    %83 = arith.mulf %80, %80 : vector<1x128xf32>
    %84 = arith.subf %82, %83 : vector<1x128xf32>
    %cst_41 = arith.constant 0.000000e+00 : f32
    %85 = vector.broadcast %cst_41 : f32 to vector<1x128xf32>
    %86 = arith.maximumf %84, %85 : vector<1x128xf32>
    %cst_42 = arith.constant 9.99999974E-6 : f32
    %87 = vector.broadcast %cst_42 : f32 to vector<1x128xf32>
    %88 = arith.addf %86, %87 : vector<1x128xf32>
    %89 = math.rsqrt %88 : vector<1x128xf32>
    %c0_43 = arith.constant 0 : index
    %c0_44 = arith.constant 0 : index
    %90 = vector.load %arg11[%c0_43, %c0_44] : memref<1x128xf32, #tpu.memory_space<vmem>>, vector<1x128xf32>
    %91 = arith.mulf %89, %90 : vector<1x128xf32>
    %c0_45 = arith.constant 0 : index
    %c0_46 = arith.constant 0 : index
    %92 = vector.load %arg12[%c0_45, %c0_46] : memref<1x128xf32, #tpu.memory_space<vmem>>, vector<1x128xf32>
    %93 = arith.mulf %80, %91 : vector<1x128xf32>
    %94 = arith.subf %92, %93 : vector<1x128xf32>
    %95 = vector.broadcast %91 : vector<1x128xf32> to vector<8x128xf32>
    %96 = arith.mulf %73, %95 : vector<8x128xf32>
    %97 = vector.broadcast %94 : vector<1x128xf32> to vector<8x128xf32>
    %98 = arith.addf %96, %97 : vector<8x128xf32>
    %cst_47 = arith.constant 2.000000e-01 : f32
    %99 = vector.broadcast %cst_47 : f32 to vector<8x128xf32>
    %100 = arith.mulf %99, %98 : vector<8x128xf32>
    %101 = arith.maximumf %98, %100 : vector<8x128xf32>
    %c0_48 = arith.constant 0 : index
    %c0_49 = arith.constant 0 : index
    %102 = vector.load %arg13[%c0_48, %c0_49] : memref<1x128xf32, #tpu.memory_space<vmem>>, vector<1x128xf32>
    %103 = vector.broadcast %102 : vector<1x128xf32> to vector<8x128xf32>
    %104 = arith.mulf %101, %103 : vector<8x128xf32>
    %cst_50 = arith.constant dense<0.000000e+00> : vector<8xf32>
    %105 = vector.multi_reduction <add>, %104, %cst_50 [1] : vector<8x128xf32> to vector<8xf32>
    %106 = vector.shape_cast %105 : vector<8xf32> to vector<8x1xf32>
    %c0_51 = arith.constant 0 : index
    %c0_52 = arith.constant 0 : index
    %107 = vector.load %arg14[%c0_51, %c0_52] : memref<1x1xf32, #tpu.memory_space<vmem>>, vector<1x1xf32>
    %108 = vector.broadcast %107 : vector<1x1xf32> to vector<8x1xf32>
    %109 = arith.addf %106, %108 : vector<8x1xf32>
    %cst_53 = arith.constant 0.000000e+00 : f32
    %110 = vector.broadcast %cst_53 : f32 to vector<8x1xf32>
    %111 = arith.subf %110, %109 : vector<8x1xf32>
    %112 = math.exp %111 : vector<8x1xf32>
    %cst_54 = arith.constant 1.000000e+00 : f32
    %113 = vector.broadcast %cst_54 : f32 to vector<8x1xf32>
    %114 = arith.addf %113, %112 : vector<8x1xf32>
    %115 = tpu.reciprocal %114 : vector<8x1xf32> -> vector<8x1xf32>
    %c0_55 = arith.constant 0 : index
    %c0_56 = arith.constant 0 : index
    %116 = vector.load %arg15[%c0_55, %c0_56] : memref<8x1xf32, #tpu.memory_space<vmem>>, vector<8x1xf32>
    tpu.vector_store %arg15[%c0_55, %c0_56], %115 {strides = array<i32>} : memref<8x1xf32, #tpu.memory_space<vmem>>, vector<8x1xf32>,
    return
  }
}

</mosaic_0001>

<bundles_post_ra>
// kernel: code_discriminator_forward.1
= control target key start
LH: loop header
LB: loop body
LE: loop exit
PB: predicated region body
PF: predicated region fallthrough
CT: control target
= control target key end

     0   :  { %v687_v0 = vmov 0.0   ;;  %vm688_vm0 = vmmov 0   ;;  %v190_v43 = vlaneseq  ;;  %vm529_vm1 = vcmask 7168   ;;  %s918_s1 = inlined_call_operand.vmem [shape: bf16[128,128], index: 1, kind: input, shape index: {}]   ;;  %s919_s0 = inlined_call_operand.vmem [shape: bf16[8,128], index: 0, kind: input, shape index: {}]   ;;  %s920_s5 = inlined_call_operand.vmem [shape: bf16[128,128], index: 5, kind: input, shape index: {}]   ;;  %s921_s2 = inlined_call_operand.vmem [shape: f32[1,128], index: 2, kind: input, shape index: {}]   ;;  %s922_s3 = inlined_call_operand.vmem [shape: f32[1,128], index: 3, kind: input, shape index: {}]   ;;  %s923_s4 = inlined_call_operand.vmem [shape: f32[1,128], index: 4, kind: input, shape index: {}]   ;;  %s924_s9 = inlined_call_operand.vmem [shape: bf16[128,128], index: 9, kind: input, shape index: {}]   ;;  %s925_s6 = inlined_call_operand.vmem [shape: f32[1,128], index: 6, kind: input, shape index: {}]   ;;  %s926_s7 = inlined_call_operand.vmem [shape: f32[1,128], index: 7, kind: input, shape index: {}]   ;;  %s927_s8 = inlined_call_operand.vmem [shape: f32[1,128], index: 8, kind: input, shape index: {}]   ;;  %s928_s14 = inlined_call_operand.<no memory space> [shape: f32[1,1], index: 14, kind: input, shape index: {}]   ;;  %s929_s10 = inlined_call_operand.vmem [shape: f32[1,128], index: 10, kind: input, shape index: {}]   ;;  %s930_s11 = inlined_call_operand.vmem [shape: f32[1,128], index: 11, kind: input, shape index: {}]   ;;  %s931_s12 = inlined_call_operand.vmem [shape: f32[1,128], index: 12, kind: input, shape index: {}]   ;;  %s932_s13 = inlined_call_operand.vmem [shape: f32[1,128], index: 13, kind: input, shape index: {}]   ;;  %s933_s15 = inlined_call_operand.vmem [shape: f32[8,1], index: 15, kind: output, shape index: {}]  }
   0x1   :  { %591 = vmatprep.subr.bf16.mxu0 %v687_v0  ;;  %v653_v1 = vld [vmem:[%s918_s1] sm:$0xff]   ;;  %607 = vmatprep.mubr.msk.bf16.mxu0 %vm688_vm0, %v687_v0  ;;  %v654_v2 = vld [vmem:[%s918_s1 + $0x8] sm:$0xff]   ;;  %v655_v3 = vld [vmem:[%s918_s1 + $0x10] sm:$0xff]  }
   0x2   :  { %611 = vmatprep.subr.bf16.mxu1 %v687_v0  ;;  %627 = vmatprep.mubr.msk.bf16.mxu1 %vm688_vm0, %v687_v0  ;;  %v656_v4 = vld [vmem:[%s918_s1 + $0x18] sm:$0xff]   ;;  %v657_v5 = vld [vmem:[%s918_s1 + $0x20] sm:$0xff]   ;;  %v658_v6 = vld [vmem:[%s918_s1 + $0x28] sm:$0xff]   ;;  %v191_v44 = vshrl.u32 %v190_v43, 7 }
   0x3   :  { %592 = vmatpush3.bf16.msra.mxu0 %v653_v1  ;;  %v659_v7 = vld [vmem:[%s918_s1 + $0x30] sm:$0xff]   ;;  %v660_v8 = vld [vmem:[%s918_s1 + $0x38] sm:$0xff]   ;;  %v53_v9 = vld [vmem:[%s919_s0] sm:$0xf] }
   0x4   :  { %593 = vmatprep.subr.bf16.mxu0 %v687_v0  ;;  %v661_v10 = vld [vmem:[%s920_s5] sm:$0xff]   ;;  %v662_v11 = vld [vmem:[%s920_s5 + $0x8] sm:$0xff]   ;;  %v663_v12 = vld [vmem:[%s920_s5 + $0x10] sm:$0xff]   ;;  %v849_v46 = vsub.s32 0, %v191_v44 }
   0x5   :  { %612 = vmatpush3.bf16.msra.mxu1 %v661_v10  ;;  %v664_v13 = vld [vmem:[%s920_s5 + $0x18] sm:$0xff]   ;;  %v665_v14 = vld [vmem:[%s920_s5 + $0x20] sm:$0xff]   ;;  %v666_v15 = vld [vmem:[%s920_s5 + $0x28] sm:$0xff]  }
   0x6   :  { %613 = vmatprep.subr.bf16.mxu1 %v687_v0  ;;  %v667_v16 = vld [vmem:[%s920_s5 + $0x30] sm:$0xff]   ;;  %v668_v17 = vld [vmem:[%s920_s5 + $0x38] sm:$0xff]   ;;  %v535_v18 = vld [vmem:[%s921_s2] ss:$0 sm:$0xff] }
   0x7   :  { %594 = vmatpush3.bf16.msra.mxu0 %v654_v2  ;;  %v185_v45 = vld [vmem:[%s922_s3] sm:$0x1]  ;;  %v670_v60 = vld [vmem:[%s924_s9 + $0x8] sm:$0xff]   ;;  %v671_v61 = vld [vmem:[%s924_s9 + $0x10] sm:$0xff]  }
   0x8   :  { %595 = vmatprep.subr.bf16.mxu0 %v687_v0  ;;  %v187_v49 = vld [vmem:[%s923_s4] sm:$0x1]  ;;  %v672_v62 = vld [vmem:[%s924_s9 + $0x18] sm:$0xff]   ;;  %v674_v1 = vld [vmem:[%s924_s9 + $0x28] sm:$0xff]  }
   0x9   :  { %614 = vmatpush3.bf16.msra.mxu1 %v662_v11  ;;  %v669_v59 = vld [vmem:[%s924_s9] sm:$0xff]   ;;  %v675_v2 = vld [vmem:[%s924_s9 + $0x30] sm:$0xff]  }
   0xa   :  { %615 = vmatprep.subr.bf16.mxu1 %v687_v0  ;;  %v673_v63 = vld [vmem:[%s924_s9 + $0x20] sm:$0xff]  }
   0xb   :  { %596 = vmatpush3.bf16.msra.mxu0 %v655_v3  ;;  %v676_v3 = vld [vmem:[%s924_s9 + $0x38] sm:$0xff]  }
   0xc   :  { %597 = vmatprep.subr.bf16.mxu0 %v687_v0 }
   0xd   :  { %616 = vmatpush3.bf16.msra.mxu1 %v663_v12 }
   0xe   :  { %617 = vmatprep.subr.bf16.mxu1 %v687_v0 }
   0xf   :  { %598 = vmatpush3.bf16.msra.mxu0 %v656_v4  ;;  %v544_v4 = vld [vmem:[%s925_s6] ss:$0 sm:$0xff] }
  0x10   :  { %599 = vmatprep.subr.bf16.mxu0 %v687_v0 }
  0x11   :  { %618 = vmatpush3.bf16.msra.mxu1 %v664_v13 }
  0x12   :  { %619 = vmatprep.subr.bf16.mxu1 %v687_v0 }
  0x13   :  { %600 = vmatpush3.bf16.msra.mxu0 %v657_v5 }
  0x14   :  { %601 = vmatprep.subr.bf16.mxu0 %v687_v0 }
  0x15   :  { %620 = vmatpush3.bf16.msra.mxu1 %v665_v14 }
  0x16   :  { %621 = vmatprep.subr.bf16.mxu1 %v687_v0 }
  0x17   :  { %602 = vmatpush3.bf16.msra.mxu0 %v658_v6 }
  0x18   :  { %603 = vmatprep.subr.bf16.mxu0 %v687_v0 }
  0x19   :  { %622 = vmatpush3.bf16.msra.mxu1 %v666_v15 }
  0x1a   :  { %623 = vmatprep.subr.bf16.mxu1 %v687_v0 }
  0x1b   :  { %604 = vmatpush3.bf16.msra.mxu0 %v659_v7 }
  0x1c   :  { %605 = vmatprep.subr.bf16.mxu0 %v687_v0 }
  0x1d   :  { %624 = vmatpush3.bf16.msra.mxu1 %v667_v16 }
  0x1e   :  { %625 = vmatprep.subr.bf16.mxu1 %v687_v0 }
  0x1f   :  { %606 = vmatpush3.bf16.msra.mxu0 %v660_v8 }
  0x20   :  { %631 = vmatprep.subr.bf16.mxu0 %v687_v0 }
  0x21   :  { %626 = vmatpush3.bf16.msra.mxu1 %v668_v17 }
  0x22   :  { %608 = vmatmul.mubr.bf16.vlgmr.msra.gmra.mrb[0].mxu0 %v53_v9 }
  0x23   :  { %647 = vmatprep.mubr.msk.bf16.mxu0 %vm688_vm0, %v687_v0  ;;  %632 = vmatpush3.bf16.msra.mxu0 %v669_v59 }
  0x24   :  { %633 = vmatprep.subr.bf16.mxu0 %v687_v0 }
  0x27   :  { %634 = vmatpush3.bf16.msra.mxu0 %v670_v60 }
  0x28   :  { %635 = vmatprep.subr.bf16.mxu0 %v687_v0 }
  0x2b   :  { %636 = vmatpush3.bf16.msra.mxu0 %v671_v61 }
  0x2c   :  { %637 = vmatprep.subr.bf16.mxu0 %v687_v0 }
  0x2f   :  { %638 = vmatpush3.bf16.msra.mxu0 %v672_v62 }
  0x30   :  { %639 = vmatprep.subr.bf16.mxu0 %v687_v0 }
  0x33   :  { %640 = vmatpush3.bf16.msra.mxu0 %v673_v63 }
  0x34   :  { %641 = vmatprep.subr.bf16.mxu0 %v687_v0 }
  0x37   :  { %642 = vmatpush3.bf16.msra.mxu0 %v674_v1 }
  0x38   :  { %643 = vmatprep.subr.bf16.mxu0 %v687_v0 }
  0x3b   :  { %644 = vmatpush3.bf16.msra.mxu0 %v675_v2 }
  0x3c   :  { %645 = vmatprep.subr.bf16.mxu0 %v687_v0 }
  0x3f   :  { %646 = vmatpush3.bf16.msra.mxu0 %v676_v3 }
  0xf5   :  { %v159_v19 = vpop.f32.mrb[0].mxu0 }
  0xf6   :  { %v160_v20 = vadd.f32 %v535_v18, %v159_v19  ;;  %v609_v21 = vpop.f32.mrb[1].mxu0 }
  0xf7   :  { %v162_v22 = vpop.f32.mrb[2].mxu0 }
  0xf8   :  { %v165_v23 = vrot.slane %v160_v20, 4  ;;  %v171_v24 = vmul.f32 %v160_v20, %v160_v20  ;;  %v610_v25 = vpop.f32.mrb[3].mxu0 }
  0xfa   :  { %v166_v26 = vadd.f32 %v165_v23, %v160_v20  ;;  %v172_v27 = vrot.slane %v171_v24, 4 }
  0xfc   :  { %v167_v28 = vrot.slane %v166_v26, 2  ;;  %v173_v29 = vadd.f32 %v172_v27, %v171_v24 }
  0xfe   :  { %v168_v30 = vadd.f32 %v167_v28, %v166_v26  ;;  %v174_v31 = vrot.slane %v173_v29, 2  ;;  %v336_v28 = vld [vmem:[%s926_s7] sm:$0x1] }
 0x100   :  { %v169_v32 = vrot.slane %v168_v30, 1  ;;  %v175_v33 = vadd.f32 %v174_v31, %v173_v29  ;;  %v338_v31 = vld [vmem:[%s927_s8] sm:$0x1] }
 0x102   :  { %v170_v34 = vadd.f32 %v169_v32, %v168_v30  ;;  %v176_v35 = vrot.slane %v175_v33, 1 }
 0x104   :  { %v177_v36 = vadd.f32 %v176_v35, %v175_v33  ;;  %v178_v37 = vmul.f32 0.125, %v170_v34 }
 0x106   :  { %v179_v38 = vmul.f32 0.125, %v177_v36  ;;  %v180_v39 = vmul.f32 %v178_v37, %v178_v37 }
 0x108   :  { %v181_v40 = vsub.f32 %v179_v38, %v180_v39 }
 0x10a   :  { %v182_v41 = vmax.f32 %v181_v40, 0.0 }
 0x10c   :  { %v183_v42 = vadd.f32 1e-05, %v182_v41  ;;  %v20_v41 = vstv %s928_s14 }
 0x10d   :  { %21 = vst [vmem:[#allocation2] sm:$0x1] %v20_v41 }
 0x10e   :  { %677 = vrsqrt.f32 %v183_v42  ;;  %v553_v42 = vld [vmem:[%s929_s10] ss:$0 sm:$0xff] }
 0x118   :  { %v678_v47 = vpop.eup %677 }
 0x119   :  { %v186_v48 = vmul.f32 %v678_v47, %v185_v45 }
 0x11b   :  { %v188_v50 = vmul.f32 %v186_v48, %v178_v37  ;;  %v193_v51 = vrot.slane %v186_v48, %v849_v46 }
 0x11d   :  { %v189_v52 = vsub.f32 %v187_v49, %v188_v50  ;;  %v194_v53 = vmul.f32 %v193_v51, %v160_v20 }
 0x11f   :  { %v199_v54 = vrot.slane %v189_v52, %v849_v46 }
 0x121   :  { %v201_v55 = vadd.f32 %v199_v54, %v194_v53 }
 0x123   :  { %v202_v56 = vmul.f32 0.2, %v201_v55 }
 0x125   :  { %v203_v57 = vmax.f32 %v201_v55, %v202_v56 }
 0x127   :  { %v204_v58 = vpack.c.bf16 %v203_v57, %v203_v57 }
 0x129   :  { %628 = vmatmul.mubr.bf16.vlgmr.msra.gmra.mrb[0].mxu1 %v204_v58 }
 0x1fc   :  { %v310_v5 = vpop.f32.mrb[0].mxu1 }
 0x1fd   :  { %v311_v6 = vadd.f32 %v544_v4, %v310_v5  ;;  %v629_v7 = vpop.f32.mrb[1].mxu1  ;;  %v487_v5 = vld [vmem:[%s930_s11] sm:$0x1] }
 0x1fe   :  { %v313_v8 = vpop.f32.mrb[2].mxu1 }
 0x1ff   :  { %v316_v9 = vrot.slane %v311_v6, 4  ;;  %v322_v10 = vmul.f32 %v311_v6, %v311_v6  ;;  %v630_v11 = vpop.f32.mrb[3].mxu1  ;;  %v489_v8 = vld [vmem:[%s931_s12] sm:$0x1] }
 0x201   :  { %v317_v12 = vadd.f32 %v316_v9, %v311_v6  ;;  %v323_v13 = vrot.slane %v322_v10, 4 }
 0x203   :  { %v318_v14 = vrot.slane %v317_v12, 2  ;;  %v324_v15 = vadd.f32 %v323_v13, %v322_v10 }
 0x205   :  { %v319_v16 = vadd.f32 %v318_v14, %v317_v12  ;;  %v325_v17 = vrot.slane %v324_v15, 2 }
 0x207   :  { %v320_v18 = vrot.slane %v319_v16, 1  ;;  %v326_v0 = vadd.f32 %v325_v17, %v324_v15 }
 0x209   :  { %v321_v19 = vadd.f32 %v320_v18, %v319_v16  ;;  %v327_v20 = vrot.slane %v326_v0, 1  ;;  %v562_v16 = vld [vmem:[%s932_s13] ss:$0 sm:$0xff] }
 0x20b   :  { %v328_v21 = vadd.f32 %v327_v20, %v326_v0  ;;  %v329_v22 = vmul.f32 0.125, %v321_v19  ;;  %v563_v0 = vld [vmem:[#allocation2] ss:$0 sm:$0xff] }
 0x20d   :  { %v330_v23 = vmul.f32 0.125, %v328_v21  ;;  %v331_v24 = vmul.f32 %v329_v22, %v329_v22 }
 0x20f   :  { %v332_v25 = vsub.f32 %v330_v23, %v331_v24 }
 0x211   :  { %v333_v26 = vmax.f32 %v332_v25, 0.0 }
 0x213   :  { %v334_v27 = vadd.f32 1e-05, %v333_v26 }
 0x215   :  { %679 = vrsqrt.f32 %v334_v27 }
 0x21f   :  { %v680_v29 = vpop.eup %679 }
 0x220   :  { %v337_v30 = vmul.f32 %v680_v29, %v336_v28 }
 0x222   :  { %v339_v32 = vmul.f32 %v337_v30, %v329_v22  ;;  %v344_v33 = vrot.slane %v337_v30, %v849_v46 }
 0x224   :  { %v340_v34 = vsub.f32 %v338_v31, %v339_v32  ;;  %v345_v35 = vmul.f32 %v344_v33, %v311_v6 }
 0x226   :  { %v350_v36 = vrot.slane %v340_v34, %v849_v46 }
 0x228   :  { %v352_v37 = vadd.f32 %v350_v36, %v345_v35 }
 0x22a   :  { %v353_v38 = vmul.f32 0.2, %v352_v37 }
 0x22c   :  { %v354_v39 = vmax.f32 %v352_v37, %v353_v38 }
 0x22e   :  { %v355_v40 = vpack.c.bf16 %v354_v39, %v354_v39 }
 0x230   :  { %648 = vmatmul.mubr.bf16.vlgmr.msra.gmra.mrb[4].mxu0 %v355_v40 }
 0x303   :  { %v461_v43 = vpop.f32.mrb[4].mxu0 }
 0x304   :  { %v462_v44 = vadd.f32 %v553_v42, %v461_v43  ;;  %v649_v45 = vpop.f32.mrb[5].mxu0 }
 0x305   :  { %v464_v47 = vpop.f32.mrb[6].mxu0 }
 0x306   :  { %v467_v48 = vrot.slane %v462_v44, 4  ;;  %v473_v49 = vmul.f32 %v462_v44, %v462_v44  ;;  %v650_v50 = vpop.f32.mrb[7].mxu0 }
 0x308   :  { %v468_v51 = vadd.f32 %v467_v48, %v462_v44  ;;  %v474_v52 = vrot.slane %v473_v49, 4 }
 0x30a   :  { %v469_v53 = vrot.slane %v468_v51, 2  ;;  %v475_v54 = vadd.f32 %v474_v52, %v473_v49 }
 0x30c   :  { %v470_v55 = vadd.f32 %v469_v53, %v468_v51  ;;  %v476_v56 = vrot.slane %v475_v54, 2 }
 0x30e   :  { %v471_v57 = vrot.slane %v470_v55, 1  ;;  %v477_v58 = vadd.f32 %v476_v56, %v475_v54 }
 0x310   :  { %v478_v59 = vrot.slane %v477_v58, 1  ;;  %v472_v60 = vadd.f32 %v471_v57, %v470_v55 }
 0x312   :  { %v479_v61 = vadd.f32 %v478_v59, %v477_v58  ;;  %v480_v62 = vmul.f32 0.125, %v472_v60 }
 0x314   :  { %v481_v63 = vmul.f32 0.125, %v479_v61  ;;  %v482_v1 = vmul.f32 %v480_v62, %v480_v62 }
 0x316   :  { %v483_v2 = vsub.f32 %v481_v63, %v482_v1 }
 0x318   :  { %v484_v3 = vmax.f32 %v483_v2, 0.0 }
 0x31a   :  { %v485_v4 = vadd.f32 1e-05, %v484_v3 }
 0x31c   :  { %681 = vrsqrt.f32 %v485_v4 }
 0x326   :  { %v682_v6 = vpop.eup %681 }
 0x327   :  { %v488_v7 = vmul.f32 %v682_v6, %v487_v5 }
 0x329   :  { %v490_v9 = vmul.f32 %v488_v7, %v480_v62  ;;  %v495_v10 = vrot.slane %v488_v7, %v849_v46 }
 0x32b   :  { %v491_v11 = vsub.f32 %v489_v8, %v490_v9  ;;  %v496_v12 = vmul.f32 %v495_v10, %v462_v44 }
 0x32d   :  { %v501_v13 = vrot.slane %v491_v11, %v849_v46 }
 0x32f   :  { %v503_v14 = vadd.f32 %v501_v13, %v496_v12 }
 0x331   :  { %v504_v15 = vmul.f32 0.2, %v503_v14 }
 0x333   :  { %v505_v17 = vmax.f32 %v503_v14, %v504_v15 }
 0x335   :  { %v513_v18 = vmul.f32 %v562_v16, %v505_v17 }
 0x337   :  { %514 = vadd.xlane.f32.xlu0 %v513_v18 }
 0x3c4   :  { %v515_v19 = vpop.xlane.xlu0 %514 }
 0x3c5   :  { %v523_v20 = vadd.f32 %v563_v0, %v515_v19 }
 0x3c7   :  { %v524_v21 = vsub.f32 0.0, %v523_v20 }
 0x3c9   :  { %v525_v22 = vmul.f32 1.442695, %v524_v21 }
 0x3cb   :  { %683 = vpow2.f32 %v525_v22 }
 0x3d5   :  { %v684_v23 = vpop.eup %683 }
 0x3d6   :  { %v527_v24 = vadd.f32 1.0, %v684_v23 }
 0x3d8   :  { %685 = vrcp.f32 %v527_v24 }
 0x3e2   :  { %v686_v46 = vpop.eup %685 }
 0x3e3   :  { %530 = vst.msk [vmem:[%s933_s15] sm:$0xff] %vm529_vm1, %v686_v46 }

</bundles_post_ra>
